<compile_context>
chip_gen: v7x
topology: tpu7x:2x2x1
jax: 0.10.0
libtpu: 0.0.40
codegen_flags: <defaults>
</compile_context>

<pallas_src>
import functools

import jax
import jax.numpy as jnp
from jax.experimental import pallas as pl
from jax.experimental.pallas import tpu as pltpu

EPS = 1e-6


def _round_up(a, b):
    return (a + b - 1) // b * b


def _residual_block_kernel(x_ref, w_ref, b_ref, gamma_ref, beta_ref, o_ref,
                           *, d_model: int):
    # --- self.layer(x): Linear(d_model, d_model) on the MXU ---
    x_in = x_ref[...]                                            # (tm, Dp), native dtype
    y = jnp.dot(x_in, w_ref[...], preferred_element_type=jnp.float32)
    y = y + b_ref[...].astype(jnp.float32)                       # (tm, Dp), f32

    # --- self.dropout(y): inference mode -> identity ---
    # TODO(synk): training-mode dropout (pltpu.prng_seed / prng_random_bits mask) omitted.

    # --- residual add (f32 epilogue); padded lanes of x and y are exactly 0 ---
    r = x_in.astype(jnp.float32) + y                             # (tm, Dp)

    # --- LayerNorm (torch semantics: unbiased std, divide by (std + eps)) ---
    d_pad = r.shape[-1]
    mean = jnp.sum(r, axis=-1, keepdims=True) * (1.0 / d_model)  # padded lanes contribute 0
    centered = r - mean
    if d_pad > d_model:
        # Mask padded lanes out of the variance reduction only.
        lane_ids = jax.lax.broadcasted_iota(jnp.int32, (1, d_pad), 1)
        csq = jnp.where(lane_ids < d_model, centered, 0.0)
    else:
        csq = centered
    var_unbiased = jnp.sum(csq * csq, axis=-1, keepdims=True) * (1.0 / (d_model - 1))
    std = jnp.sqrt(var_unbiased)
    inv = pl.reciprocal(std + EPS, approx=False)                 # (tm, 1)
    gamma = gamma_ref[...].astype(jnp.float32)                   # (1, Dp)
    beta = beta_ref[...].astype(jnp.float32)                     # (1, Dp)
    out = centered * (gamma * inv) + beta                        # gamma folded into scale
    o_ref[...] = out.astype(o_ref.dtype)


def residual_block(x, w, b, gamma, beta, *, tm=None):
    """x: (B, S, D); w: (D, D) with y = x @ w; b, gamma, beta: (D,). Returns (B, S, D)."""
    B, S, D = x.shape
    M = B * S

    # Lane-dense layout: pad d_model up to a multiple of 128 lanes.
    Dp = _round_up(D, 128)
    # Row tile: multiple of 8 sublanes, large enough to amortize per-step overhead.
    if tm is None:
        tm = min(512, _round_up(M, 8))
    tm = _round_up(tm, 8)
    Mp = _round_up(M, tm)

    x2 = x.reshape(M, D)
    x2 = jnp.pad(x2, ((0, Mp - M), (0, Dp - D)))
    wp = jnp.pad(w, ((0, Dp - D), (0, Dp - D)))
    bp = jnp.pad(b, (0, Dp - D)).reshape(1, Dp)
    gp = jnp.pad(gamma, (0, Dp - D)).reshape(1, Dp)
    be = jnp.pad(beta, (0, Dp - D)).reshape(1, Dp)

    kernel = functools.partial(_residual_block_kernel, d_model=D)

    out2 = pl.pallas_call(
        kernel,
        out_shape=jax.ShapeDtypeStruct((Mp, Dp), x.dtype),
        grid_spec=pltpu.PrefetchScalarGridSpec(
            num_scalar_prefetch=0,
            grid=(Mp // tm,),
            in_specs=[
                pl.BlockSpec((tm, Dp), lambda i: (i, 0)),   # x rows (streamed)
                pl.BlockSpec((Dp, Dp), lambda i: (0, 0)),   # weight (resident across grid)
                pl.BlockSpec((1, Dp), lambda i: (0, 0)),    # bias
                pl.BlockSpec((1, Dp), lambda i: (0, 0)),    # gamma
                pl.BlockSpec((1, Dp), lambda i: (0, 0)),    # beta
            ],
            out_specs=pl.BlockSpec((tm, Dp), lambda i: (i, 0)),
        ),
        compiler_params=pltpu.CompilerParams(
            dimension_semantics=("parallel",),
            vmem_limit_bytes=64 * 1024 * 1024,
        ),
    )(x2, wp, bp, gp, be)
    return out2[:M, :D].reshape(B, S, D)


def _reference(x, w, b, gamma, beta):
    # Pure-JAX reference replicating the PyTorch forward exactly (eval mode).
    y = jnp.einsum("bsd,de->bse", x, w) + b
    r = x + y
    mean = jnp.mean(r, axis=-1, keepdims=True)
    centered = r - mean
    d = r.shape[-1]
    std = jnp.sqrt(jnp.sum(centered**2, axis=-1, keepdims=True) / (d - 1))
    return gamma * centered / (std + EPS) + beta


if __name__ == "__main__":
    B, S, D = 2, 8, 32  # batch=2, seq=8, d_model=32

    key = jax.random.PRNGKey(0)
    kx, kw, kb = jax.random.split(key, 3)
    x = jax.random.normal(kx, (B, S, D), dtype=jnp.float32)

    # Deterministic parameter init (synthetic, not a checkpoint):
    w = jax.random.normal(kw, (D, D), dtype=jnp.float32) * 0.05   # Linear weight (y = x @ w)
    b = jax.random.normal(kb, (D,), dtype=jnp.float32) * 0.01     # Linear bias
    gamma = jnp.ones((D,), dtype=jnp.float32)                     # LayerNorm gamma
    beta = jnp.zeros((D,), dtype=jnp.float32)                     # LayerNorm beta

    out = jax.block_until_ready(residual_block(x, w, b, gamma, beta))

    ref = _reference(x, w, b, gamma, beta)
    assert out.shape == (B, S, D)
    assert jnp.allclose(out, ref, atol=1e-4, rtol=1e-4), "mismatch vs reference"

    print("KERNEL_OK")
</pallas_src>

<mosaic_0001>
module attributes {stable_mosaic.version = 11 : i64} {
  func.func @_residual_block_kernel(%arg0: i32, %arg1: memref<16x128xf32, #tpu.memory_space<vmem>>, %arg2: memref<128x128xf32, #tpu.memory_space<vmem>>, %arg3: memref<1x128xf32, #tpu.memory_space<vmem>>, %arg4: memref<1x128xf32, #tpu.memory_space<vmem>>, %arg5: memref<1x128xf32, #tpu.memory_space<vmem>>, %arg6: memref<16x128xf32, #tpu.memory_space<vmem>>) attributes {dimension_semantics = [#tpu.dimension_semantics<parallel>], iteration_bounds = array<i64: 1>, scalar_prefetch = 0 : i64, scratch_operands = 0 : i64, tpu.core_type = #tpu.core_type<tc>, window_params = [{transform_indices = @transform_0, window_bounds = array<i64: 16, 128>}, {pipeline_mode = #tpu.pipeline_mode<synchronous>, transform_indices = @transform_1, window_bounds = array<i64: 128, 128>}, {pipeline_mode = #tpu.pipeline_mode<synchronous>, transform_indices = @transform_2, window_bounds = array<i64: 1, 128>}, {pipeline_mode = #tpu.pipeline_mode<synchronous>, transform_indices = @transform_3, window_bounds = array<i64: 1, 128>}, {pipeline_mode = #tpu.pipeline_mode<synchronous>, transform_indices = @transform_4, window_bounds = array<i64: 1, 128>}, {transform_indices = @transform_5, window_bounds = array<i64: 16, 128>}]} {
    %c0 = arith.constant 0 : index
    %c0_0 = arith.constant 0 : index
    %0 = vector.load %arg1[%c0, %c0_0] : memref<16x128xf32, #tpu.memory_space<vmem>>, vector<16x128xf32>
    %c0_1 = arith.constant 0 : index
    %c0_2 = arith.constant 0 : index
    %1 = vector.load %arg2[%c0_1, %c0_2] : memref<128x128xf32, #tpu.memory_space<vmem>>, vector<128x128xf32>
    %cst = arith.constant dense<0.000000e+00> : vector<16x128xf32>
    %2 = tpu.matmul %0, %1, %cst {dimension_numbers = #tpu.dot_dimension_numbers<[1], [0], [0], [1], [0, 0, 1, 1], [], []>} : vector<16x128xf32>, vector<128x128xf32>, vector<16x128xf32> -> vector<16x128xf32>
    %c0_3 = arith.constant 0 : index
    %c0_4 = arith.constant 0 : index
    %3 = vector.load %arg3[%c0_3, %c0_4] : memref<1x128xf32, #tpu.memory_space<vmem>>, vector<1x128xf32>
    %4 = vector.broadcast %3 : vector<1x128xf32> to vector<16x128xf32>
    %5 = arith.addf %2, %4 : vector<16x128xf32>
    %6 = arith.addf %0, %5 : vector<16x128xf32>
    %cst_5 = arith.constant dense<0.000000e+00> : vector<16xf32>
    %7 = vector.multi_reduction <add>, %6, %cst_5 [1] : vector<16x128xf32> to vector<16xf32>
    %8 = vector.shape_cast %7 : vector<16xf32> to vector<16x1xf32>
    %cst_6 = arith.constant 3.125000e-02 : f32
    %9 = vector.broadcast %cst_6 : f32 to vector<16x1xf32>
    %10 = arith.mulf %8, %9 : vector<16x1xf32>
    %11 = vector.broadcast %10 : vector<16x1xf32> to vector<16x128xf32>
    %12 = arith.subf %6, %11 : vector<16x128xf32>
    %13 = tpu.iota {dimensions = array<i32: 1>} : vector<1x128xi32>
    %c32_i32 = arith.constant 32 : i32
    %14 = vector.broadcast %c32_i32 : i32 to vector<1x128xi32>
    %15 = arith.cmpi slt, %13, %14 : vector<1x128xi32>
    %cst_7 = arith.constant 0.000000e+00 : f32
    %16 = vector.shape_cast %15 : vector<1x128xi1> to vector<1x128xi1>
    %17 = vector.broadcast %16 : vector<1x128xi1> to vector<16x128xi1>
    %18 = vector.broadcast %cst_7 : f32 to vector<16x128xf32>
    %19 = arith.select %17, %12, %18 : vector<16x128xi1>, vector<16x128xf32>
    %20 = arith.mulf %19, %19 : vector<16x128xf32>
    %cst_8 = arith.constant dense<0.000000e+00> : vector<16xf32>
    %21 = vector.multi_reduction <add>, %20, %cst_8 [1] : vector<16x128xf32> to vector<16xf32>
    %22 = vector.shape_cast %21 : vector<16xf32> to vector<16x1xf32>
    %cst_9 = arith.constant 0.0322580636 : f32
    %23 = vector.broadcast %cst_9 : f32 to vector<16x1xf32>
    %24 = arith.mulf %22, %23 : vector<16x1xf32>
    %25 = math.sqrt %24 : vector<16x1xf32>
    %cst_10 = arith.constant 9.99999997E-7 : f32
    %26 = vector.broadcast %cst_10 : f32 to vector<16x1xf32>
    %27 = arith.addf %25, %26 : vector<16x1xf32>
    %28 = tpu.reciprocal %27 : vector<16x1xf32> -> vector<16x1xf32>
    %c0_11 = arith.constant 0 : index
    %c0_12 = arith.constant 0 : index
    %29 = vector.load %arg4[%c0_11, %c0_12] : memref<1x128xf32, #tpu.memory_space<vmem>>, vector<1x128xf32>
    %c0_13 = arith.constant 0 : index
    %c0_14 = arith.constant 0 : index
    %30 = vector.load %arg5[%c0_13, %c0_14] : memref<1x128xf32, #tpu.memory_space<vmem>>, vector<1x128xf32>
    %31 = vector.broadcast %29 : vector<1x128xf32> to vector<16x128xf32>
    %32 = vector.broadcast %28 : vector<16x1xf32> to vector<16x128xf32>
    %33 = arith.mulf %31, %32 : vector<16x128xf32>
    %34 = arith.mulf %12, %33 : vector<16x128xf32>
    %35 = vector.broadcast %30 : vector<1x128xf32> to vector<16x128xf32>
    %36 = arith.addf %34, %35 : vector<16x128xf32>
    %c0_15 = arith.constant 0 : index
    %c0_16 = arith.constant 0 : index
    %37 = vector.load %arg6[%c0_15, %c0_16] : memref<16x128xf32, #tpu.memory_space<vmem>>, vector<16x128xf32>
    tpu.vector_store %arg6[%c0_15, %c0_16], %36 {strides = array<i32>} : memref<16x128xf32, #tpu.memory_space<vmem>>, vector<16x128xf32>,
    return
  }
  func.func @transform_0(%arg0: i32) -> (i32, i32) {
    %c0_i32 = arith.constant 0 : i32
    %c0_i32_0 = arith.constant 0 : i32
    return %arg0, %c0_i32 : i32, i32
  }
  func.func @transform_1(%arg0: i32) -> (i32, i32) {
    %c0_i32 = arith.constant 0 : i32
    %c0_i32_0 = arith.constant 0 : i32
    %c0_i32_1 = arith.constant 0 : i32
    return %c0_i32, %c0_i32_0 : i32, i32
  }
  func.func @transform_2(%arg0: i32) -> (i32, i32) {
    %c0_i32 = arith.constant 0 : i32
    %c0_i32_0 = arith.constant 0 : i32
    %c0_i32_1 = arith.constant 0 : i32
    return %c0_i32, %c0_i32_0 : i32, i32
  }
  func.func @transform_3(%arg0: i32) -> (i32, i32) {
    %c0_i32 = arith.constant 0 : i32
    %c0_i32_0 = arith.constant 0 : i32
    %c0_i32_1 = arith.constant 0 : i32
    return %c0_i32, %c0_i32_0 : i32, i32
  }
  func.func @transform_4(%arg0: i32) -> (i32, i32) {
    %c0_i32 = arith.constant 0 : i32
    %c0_i32_0 = arith.constant 0 : i32
    %c0_i32_1 = arith.constant 0 : i32
    return %c0_i32, %c0_i32_0 : i32, i32
  }
  func.func @transform_5(%arg0: i32) -> (i32, i32) {
    %c0_i32 = arith.constant 0 : i32
    %c0_i32_0 = arith.constant 0 : i32
    return %arg0, %c0_i32 : i32, i32
  }
}

</mosaic_0001>

<bundles_post_ra>
// kernel: tpu_custom_call.1
= control target key start
LH: loop header
LB: loop body
LE: loop exit
PB: predicated region body
PF: predicated region fallthrough
CT: control target
= control target key end

     0   :  { %10 = vsyncpa [#allocation3], 0  ;;  %s638_s0 = inlined_call_operand.hbm [shape: f32[16,128], index: 0, kind: input, shape index: {}]   ;;  %s639_s1 = inlined_call_operand.hbm [shape: f32[128,128], index: 1, kind: input, shape index: {}]   ;;  %s640_s2 = inlined_call_operand.hbm [shape: f32[1,128], index: 2, kind: input, shape index: {}]   ;;  %s641_s3 = inlined_call_operand.hbm [shape: f32[1,128], index: 3, kind: input, shape index: {}]   ;;  %s642_s4 = inlined_call_operand.hbm [shape: f32[1,128], index: 4, kind: input, shape index: {}]   ;;  %s643_s5 = inlined_call_operand.hbm [shape: f32[16,128], index: 5, kind: output, shape index: {}]  }
   0x1   :  { %11 = vsyncpa [#allocation6], 0 }
   0x2   :  { %12 = vsyncpa [#allocation9], 0 }
   0x3   :  { %13 = vsyncpa [#allocation4], 0  ;;  %s511_s18 = smov [#allocation5]   ;;  %s512_s20 = smov [#allocation8]  }
   0x4   :  { %s31_s19 = sshll.u32 %s511_s18, 4  ;;  %s54_s21 = sshll.u32 %s512_s20, 4  ;;  %s32_s19 = int_to_ptr.vmem [resolvable:$true] %s31_s19  ;;  %s549_s21 = int_to_ptr.vmem [resolvable:$true] %s54_s21 }
   0x5   :  { %s371_s24 = scalar_lea.hbm %s639_s1, 2048 }
   0x6   :  { %p372_p0 = scmp.ne.s32.totalorder %s639_s1, %s371_s24  ;;  %p375_p1 = scmp.lt.u32.totalorder %s371_s24, %s639_s1 }
   0x8   :  { %p377_p2 = pnand %p375_p1, %p372_p0 }
   0xa   :  { %380 = shalt.err (!%p377_p2)
}
   0xb   :  { %s381_s29 = scalar_lea.vmem %s32_s19, 2048  ;;  %p386_p4 = scmp.lt.s32.totalorder %s32_s19, %s32_s19 }
   0xc   :  { %p382_p3 = scmp.ne.s32.totalorder %s32_s19, %s381_s29  ;;  %p387_p5 = scmp.lt.s32.totalorder %s381_s29, %s381_s29 }
   0xe   :  { %p388_p6 = por %p387_p5, %p386_p4 }
  0x10   :  { %p389_p7 = pnand %p388_p6, %p382_p3 }
  0x12   :  { %392 = shalt.err (!%p389_p7)
}
  0x13   :  { %s513_s30 = smov 128   ;;  %s514_s6 = smov 8  }
  0x14   :  { %37 = dma.hbm_to_vmem [thread:$0]  %s639_s1, 2048, %s32_s19, [#allocation6], %s513_s30, %s513_s30, %s514_s6  }
  0x15   :  { %s393_s11 = scalar_lea.hbm %s641_s3, 16 }
  0x16   :  { %p394_p8 = scmp.ne.s32.totalorder %s641_s3, %s393_s11  ;;  %p397_p9 = scmp.lt.u32.totalorder %s393_s11, %s641_s3 }
  0x18   :  { %p399_p10 = pnand %p397_p9, %p394_p8 }
  0x1a   :  { %402 = shalt.err (!%p399_p10)
}
  0x1b   :  { %s403_s16 = scalar_lea.vmem %s549_s21, 16  ;;  %s407_s1 = scalar_lea.vmem %s549_s21, 32 }
  0x1c   :  { %p404_p11 = scmp.ne.s32.totalorder %s549_s21, %s403_s16  ;;  %p408_p12 = scmp.lt.s32.totalorder %s549_s21, %s549_s21 }
  0x1d   :  { %p409_p13 = scmp.lt.s32.totalorder %s407_s1, %s403_s16 }
  0x1f   :  { %p410_p0 = por %p409_p13, %p408_p12 }
  0x21   :  { %p411_p1 = pnand %p410_p0, %p404_p11 }
  0x23   :  { %414 = shalt.err (!%p411_p1)
}
  0x24   :  { %57 = dma.hbm_to_vmem [thread:$0]  %s641_s3, 16, %s549_s21, [#allocation9]  }
  0x25   :  { %s515_s19 = smov [#allocation2]   ;;  %s516_s22 = smov [#allocation7]  }
  0x26   :  { %s19_s20 = sshll.u32 %s515_s19, 4  ;;  %s44_s23 = sshll.u32 %s516_s22, 4  ;;  %s20_s20 = int_to_ptr.vmem [resolvable:$true] %s19_s20  ;;  %s45_s23 = int_to_ptr.vmem [resolvable:$true] %s44_s23 }
  0x27   :  { %s415_s26 = scalar_lea.hbm %s638_s0, 256 }
  0x28   :  { %p416_p2 = scmp.ne.s32.totalorder %s638_s0, %s415_s26  ;;  %p419_p3 = scmp.lt.u32.totalorder %s415_s26, %s638_s0 }
  0x2a   :  { %p421_p4 = pnand %p419_p3, %p416_p2 }
  0x2c   :  { %424 = shalt.err (!%p421_p4)
}
  0x2d   :  { %s425_s3 = scalar_lea.vmem %s20_s20, 256  ;;  %p430_p6 = scmp.lt.s32.totalorder %s20_s20, %s20_s20 }
  0x2e   :  { %p426_p5 = scmp.ne.s32.totalorder %s20_s20, %s425_s3  ;;  %p431_p7 = scmp.lt.s32.totalorder %s425_s3, %s425_s3 }
  0x30   :  { %p432_p8 = por %p431_p7, %p430_p6 }
  0x32   :  { %p433_p9 = pnand %p432_p8, %p426_p5 }
  0x34   :  { %436 = shalt.err (!%p433_p9)
}
  0x35   :  { %25 = dma.hbm_to_vmem [thread:$0]  %s638_s0, 256, %s20_s20, [#allocation3], %s513_s30, %s513_s30, %s514_s6  }
  0x36   :  { %s437_s11 = scalar_lea.hbm %s640_s2, 16 }
  0x37   :  { %p438_p10 = scmp.ne.s32.totalorder %s640_s2, %s437_s11  ;;  %p441_p11 = scmp.lt.u32.totalorder %s437_s11, %s640_s2 }
  0x39   :  { %p443_p12 = pnand %p441_p11, %p438_p10 }
  0x3b   :  { %446 = shalt.err (!%p443_p12)
}
  0x3c   :  { %s447_s16 = scalar_lea.vmem %s45_s23, 16  ;;  %s451_s1 = scalar_lea.vmem %s45_s23, 32 }
  0x3d   :  { %p448_p13 = scmp.ne.s32.totalorder %s45_s23, %s447_s16  ;;  %p452_p0 = scmp.lt.s32.totalorder %s45_s23, %s45_s23 }
  0x3e   :  { %p453_p1 = scmp.lt.s32.totalorder %s451_s1, %s447_s16 }
  0x40   :  { %p454_p2 = por %p453_p1, %p452_p0 }
  0x42   :  { %p455_p3 = pnand %p454_p2, %p448_p13 }
  0x44   :  { %458 = shalt.err (!%p455_p3)
}
  0x45   :  { %47 = dma.hbm_to_vmem [thread:$0]  %s640_s2, 16, %s45_s23, [#allocation6]  }
  0x46   :  { %s517_s18 = smov [#allocation10]   ;;  %s459_s24 = scalar_lea.hbm %s642_s4, 16 }
  0x47   :  { %s64_s19 = sshll.u32 %s517_s18, 4  ;;  %p460_p4 = scmp.ne.s32.totalorder %s642_s4, %s459_s24  ;;  %s65_s19 = int_to_ptr.vmem [resolvable:$true] %s64_s19 }
  0x48   :  { %p463_p5 = scmp.lt.u32.totalorder %s459_s24, %s642_s4 }
  0x4a   :  { %p465_p6 = pnand %p463_p5, %p460_p4 }
  0x4c   :  { %468 = shalt.err (!%p465_p6)
}
  0x4d   :  { %s469_s29 = scalar_lea.vmem %s65_s19, 16  ;;  %s473_s2 = scalar_lea.vmem %s65_s19, 32 }
  0x4e   :  { %p470_p7 = scmp.ne.s32.totalorder %s65_s19, %s469_s29  ;;  %p474_p8 = scmp.lt.s32.totalorder %s65_s19, %s65_s19 }
  0x4f   :  { %p475_p9 = scmp.lt.s32.totalorder %s473_s2, %s469_s29 }
  0x51   :  { %p476_p10 = por %p475_p9, %p474_p8 }
  0x53   :  { %p477_p11 = pnand %p476_p10, %p470_p7 }
  0x55   :  { %480 = shalt.err (!%p477_p11)
}
  0x56   :  { %67 = dma.hbm_to_vmem [thread:$0]  %s642_s4, 16, %s65_s19, [#allocation9]  }
  0x57   :  { %503 = dma.done.wait [#allocation3], 256  }
  0x58   :  { %504 = vsyncadd [#allocation3], 4294967040 }
  0x59   :  { %505 = dma.done.wait [#allocation6], 2064  }
  0x5a   :  { %506 = vsyncadd [#allocation6], 4294965232 }
  0x5b   :  { %507 = dma.done.wait [#allocation9], 32  }
  0x5c   :  { %508 = vsyncadd [#allocation9], 4294967264  ;;  %v85_v0 = vld [vmem:[#allocation5] sm:$0xff]  ;;  %v86_v1 = vld [vmem:[#allocation5 + $0x8] sm:$0xff]  ;;  %v193_v33 = vlaneseq  ;;  %s518_s4 = smov [#allocation11]  }
  0x5d   :  { %v87_v2 = vld [vmem:[#allocation5 + $0x10] sm:$0xff]  ;;  %v323_v3 = vpack.c.bf16 %v86_v1, %v85_v0  ;;  %v88_v4 = vld [vmem:[#allocation5 + $0x18] sm:$0xff]  ;;  %v89_v6 = vld [vmem:[#allocation5 + $0x20] sm:$0xff]  ;;  %s253_s3 = sshll.u32 %s518_s4, 4  ;;  %s254_s3 = int_to_ptr.vmem [resolvable:$true] %s253_s3 }
  0x5e   :  { %v327_v5 = vpack.c.bf16 %v88_v4, %v87_v2  ;;  %v90_v7 = vld [vmem:[#allocation5 + $0x28] sm:$0xff]  ;;  %v83_v9 = vld [vmem:[#allocation2] sm:$0xff]  ;;  %v92_v11 = vld [vmem:[#allocation5 + $0x38] sm:$0xff]  ;;  %v194_v34 = vand.u32 127, %v193_v33  ;;  %s481_s21 = scalar_lea.vmem %s254_s3, 256  ;;  %p486_p13 = scmp.lt.s32.totalorder %s254_s3, %s254_s3 }
  0x5f   :  { %324 = vmatprep.subr.bf16.mxu0 %v323_v3  ;;  %v331_v8 = vpack.c.bf16 %v90_v7, %v89_v6  ;;  %v91_v10 = vld [vmem:[#allocation5 + $0x30] sm:$0xff]  ;;  %320 = vmatprep.mubr.f32.mxu0 %v83_v9  ;;  %v93_v13 = vld [vmem:[#allocation5 + $0x40] sm:$0xff]  ;;  %v94_v14 = vld [vmem:[#allocation5 + $0x48] sm:$0xff]  ;;  %p482_p12 = scmp.ne.s32.totalorder %s254_s3, %s481_s21  ;;  %p487_p0 = scmp.lt.s32.totalorder %s481_s21, %s481_s21 }
  0x60   :  { %326 = vmatpush3.bf16.msra.mxu0 %v323_v3  ;;  %v335_v12 = vpack.c.bf16 %v92_v11, %v91_v10  ;;  %v339_v15 = vpack.c.bf16 %v94_v14, %v93_v13  ;;  %v95_v16 = vld [vmem:[#allocation5 + $0x50] sm:$0xff]  ;;  %v96_v17 = vld [vmem:[#allocation5 + $0x58] sm:$0xff]  ;;  %v97_v19 = vld [vmem:[#allocation5 + $0x60] sm:$0xff]  ;;  %vm195_vm0 = vcmp.lt.s32.totalorder %v194_v34, 32 }
  0x61   :  { %328 = vmatprep.subr.bf16.mxu0 %v327_v5  ;;  %v343_v18 = vpack.c.bf16 %v96_v17, %v95_v16  ;;  %v98_v20 = vld [vmem:[#allocation5 + $0x68] sm:$0xff]  ;;  %v99_v22 = vld [vmem:[#allocation5 + $0x70] sm:$0xff]  ;;  %v100_v23 = vld [vmem:[#allocation5 + $0x78] sm:$0xff]  ;;  %p488_p1 = por %p487_p0, %p486_p13 }
  0x62   :  { %v347_v21 = vpack.c.bf16 %v98_v20, %v97_v19  ;;  %v351_v24 = vpack.c.bf16 %v100_v23, %v99_v22  ;;  %v84_v25 = vld [vmem:[#allocation2 + $0x8] sm:$0xff]  ;;  %v267_v26 = vld [vmem:[#allocation7] ss:$0 sm:$0xff]  ;;  %v268_v61 = vld [vmem:[#allocation8] ss:$0 sm:$0xff] }
  0x63   :  { %v269_v0 = vld [vmem:[#allocation10] ss:$0 sm:$0xff]  ;;  %p489_p2 = pnand %p488_p1, %p482_p12 }
  0x64   :  { %330 = vmatpush3.bf16.msra.mxu0 %v327_v5 }
  0x65   :  { %332 = vmatprep.subr.bf16.mxu0 %v331_v8 }
  0x68   :  { %334 = vmatpush3.bf16.msra.mxu0 %v331_v8 }
  0x69   :  { %336 = vmatprep.subr.bf16.mxu0 %v335_v12 }
  0x6c   :  { %338 = vmatpush3.bf16.msra.mxu0 %v335_v12 }
  0x6d   :  { %340 = vmatprep.subr.bf16.mxu0 %v339_v15 }
  0x70   :  { %342 = vmatpush3.bf16.msra.mxu0 %v339_v15 }
  0x71   :  { %344 = vmatprep.subr.bf16.mxu0 %v343_v18 }
  0x74   :  { %346 = vmatpush3.bf16.msra.mxu0 %v343_v18 }
  0x75   :  { %348 = vmatprep.subr.bf16.mxu0 %v347_v21 }
  0x78   :  { %350 = vmatpush3.bf16.msra.mxu0 %v347_v21 }
  0x79   :  { %352 = vmatprep.subr.bf16.mxu0 %v351_v24 }
  0x7c   :  { %354 = vmatpush3.bf16.msra.mxu0 %v351_v24 }
  0x7f   :  { %321 = vmatmul.mubr.f32.vlgmr.msra.gmra.mrb[0].mxu0 %v84_v25 }
 0x152   :  { %v322_v27 = vpop.f32.mrb[0].mxu0 }
 0x153   :  { %v174_v28 = vpop.f32.mrb[1].mxu0  ;;  %v180_v30 = vadd.f32 %v322_v27, %v267_v26 }
 0x154   :  { %v175_v29 = vadd.f32 %v267_v26, %v174_v28 }
 0x155   :  { %v184_v32 = vadd.f32 %v180_v30, %v84_v25 }
 0x156   :  { %v183_v31 = vadd.f32 %v175_v29, %v83_v9 }
 0x158   :  { %185 = vadd.xlane.f32.xlu0 %v183_v31 }
 0x15c   :  { %187 = vadd.xlane.f32.xlu0 %v184_v32 }
 0x1e5   :  { %v186_v35 = vpop.xlane.xlu0 %185 }
 0x1e6   :  { %v189_v36 = vmul.f32 0.03125, %v186_v35 }
 0x1e8   :  { %v191_v37 = vsub.f32 %v183_v31, %v189_v36 }
 0x1e9   :  { %v188_v38 = vpop.xlane.xlu0 %187 }
 0x1ea   :  { %v190_v39 = vmul.f32 0.03125, %v188_v38  ;;  %v198_v40 = vsel %vm195_vm0, %v191_v37, 0.0 }
 0x1eb   :  { %v200_v41 = vmul.f32 %v198_v40, %v198_v40 }
 0x1ec   :  { %v192_v42 = vsub.f32 %v184_v32, %v190_v39 }
 0x1ed   :  { %202 = vadd.xlane.f32.xlu1 %v200_v41 }
 0x1ee   :  { %v199_v43 = vsel %vm195_vm0, %v192_v42, 0.0 }
 0x1ef   :  { %v201_v44 = vmul.f32 %v199_v43, %v199_v43 }
 0x1f1   :  { %204 = vadd.xlane.f32.xlu1 %v201_v44 }
 0x27a   :  { %v203_v45 = vpop.xlane.xlu1 %202 }
 0x27b   :  { %v206_v46 = vmul.f32 0.032258064, %v203_v45 }
 0x27d   :  { %363 = vrsqrt.f32 %v206_v46  ;;  %vm210_vm1 = vcmp.eq.f32.partialorder %v206_v46, inf  ;;  %v213_v51 = vand.u32 2147483648, %v206_v46  ;;  %vm212_vm2 = vcmp.eq.f32.partialorder %v206_v46, 0.0 }
 0x27e   :  { %v205_v47 = vpop.xlane.xlu1 %204 }
 0x27f   :  { %v207_v48 = vmul.f32 0.032258064, %v205_v47 }
 0x281   :  { %365 = vrsqrt.f32 %v207_v48  ;;  %vm217_vm3 = vcmp.eq.f32.partialorder %v207_v48, inf  ;;  %v220_v57 = vand.u32 2147483648, %v207_v48  ;;  %vm219_vm4 = vcmp.eq.f32.partialorder %v207_v48, 0.0 }
 0x287   :  { %v364_v49 = vpop.eup %363 }
 0x288   :  { %v209_v50 = vmul.f32 %v364_v49, %v206_v46 }
 0x28a   :  { %v211_v52 = vsel %vm210_vm1, %v206_v46, %v209_v50 }
 0x28b   :  { %v366_v53 = vpop.eup %365  ;;  %v214_v54 = vsel %vm212_vm2, %v213_v51, %v211_v52 }
 0x28c   :  { %v216_v55 = vmul.f32 %v366_v53, %v207_v48  ;;  %v222_v56 = vadd.f32 1e-06, %v214_v54 }
 0x28e   :  { %v218_v58 = vsel %vm217_vm3, %v207_v48, %v216_v55  ;;  %367 = vrcp.f32 %v222_v56 }
 0x28f   :  { %v221_v59 = vsel %vm219_vm4, %v220_v57, %v218_v58 }
 0x290   :  { %v223_v60 = vadd.f32 1e-06, %v221_v59 }
 0x292   :  { %369 = vrcp.f32 %v223_v60 }
 0x298   :  { %v368_v62 = vpop.eup %367 }
 0x299   :  { %v234_v63 = vmul.f32 %v368_v62, %v268_v61 }
 0x29b   :  { %v236_v1 = vmul.f32 %v234_v63, %v191_v37 }
 0x29c   :  { %v370_v2 = vpop.eup %369 }
 0x29d   :  { %v235_v3 = vmul.f32 %v370_v2, %v268_v61  ;;  %v244_v4 = vadd.f32 %v269_v0, %v236_v1 }
 0x29f   :  { %v237_v5 = vmul.f32 %v235_v3, %v192_v42  ;;  %246 = vst [vmem:[#allocation11] sm:$0xff] %v244_v4 }
 0x2a1   :  { %v245_v6 = vadd.f32 %v269_v0, %v237_v5 }
 0x2a3   :  { %247 = vst [vmem:[#allocation11 + $0x8] sm:$0xff] %v245_v6 }
 0x2a4   :  { %492 = shalt.err (!%p489_p2)
}
 0x2a5   :  { %s493_s10 = scalar_lea.hbm %s643_s5, 256 }
 0x2a6   :  { %p494_p3 = scmp.ne.s32.totalorder %s643_s5, %s493_s10  ;;  %p497_p4 = scmp.lt.u32.totalorder %s493_s10, %s643_s5 }
 0x2a8   :  { %p499_p5 = pnand %p497_p4, %p494_p3 }
 0x2aa   :  { %502 = shalt.err (!%p499_p5)
}
 0x2ab   :  { %259 = dma.vmem_to_hbm [thread:$0]  %s254_s3, 256, %s643_s5, [#allocation4], %s513_s30, %s513_s30, %s514_s6  }
 0x2ac   :  { %509 = dma.done.wait [#allocation4], 256  }
 0x2ad   :  { %510 = vsyncadd [#allocation4], 4294967040 }
 0x2ae   :  { %263 = vsyncpa [#allocation3], 1 }
 0x2af   :  { %264 = vsyncpa [#allocation6], 1 }
 0x2b0   :  { %265 = vsyncpa [#allocation9], 1 }
 0x2b1   :  { %266 = vsyncpa [#allocation4], 1 }

</bundles_post_ra>
